<compile_context>
chip_gen: v5e
topology: v5e:2x2
jax: 0.10.0
libtpu: 0.0.40
codegen_flags: <defaults>
</compile_context>

<pallas_src>
import jax
import jax.numpy as jnp
from jax import lax
from jax.experimental import pallas as pl
from jax.experimental.pallas import tpu as pltpu


def _round_up(v, m):
    return (v + m - 1) // m * m


def _vmem_capacity_bytes():
    try:
        return int(pltpu.get_tpu_info().vmem_capacity_bytes)
    except Exception:
        return 64 * 1024 * 1024          # conservative fallback (v7x per-core)


def _vmem_limit(per_step_bytes, cap):
    want = max(2 * int(per_step_bytes), 48 * 1024 * 1024)
    return int(min(want, int(cap * 0.9)))


def _has_bf16_vector_units():
    # v6e / v7x have bf16 VPU + EUP; v5e and older do not, so the softmax
    # exponent stays f32 there.
    try:
        kind = jax.devices()[0].device_kind.lower()
    except Exception:
        return False
    return any(tag in kind for tag in ("v6", "v7", "7x"))


def _full_spec(arr):
    nd = arr.ndim
    return pl.BlockSpec(arr.shape, lambda i, j, _nd=nd: (0,) * _nd)


# --------------------- kernel 1: pooled phi / g (conv + maxpool) -----------

def _make_pool_kernel(N4, N4P):
    padded = N4P != N4

    def kernel(x_ref, wp_ref, bp_ref, wg_ref, bg_ref,
               phi_out, g_out, acc_p, acc_g):
        k = pl.program_id(1)
        chunk = x_ref[0, 0]                                       # (N4, C) bf16
        ph = jnp.dot(chunk, wp_ref[...],
                     preferred_element_type=jnp.float32)          # (N4, C8)
        gg = jnp.dot(chunk, wg_ref[...],
                     preferred_element_type=jnp.float32)          # (N4, C2)

        @pl.when(k == 0)
        def _():
            acc_p[...] = jnp.full_like(acc_p, -jnp.inf)
            acc_g[...] = jnp.full_like(acc_g, -jnp.inf)

        acc_p[...] = jnp.maximum(acc_p[...], ph)
        acc_g[...] = jnp.maximum(acc_g[...], gg)

        @pl.when(k == 3)
        def _():
            # bias is constant across the 2x2 window -> add after the max
            phi = (acc_p[...] + bp_ref[...]).astype(jnp.bfloat16)
            g = (acc_g[...] + bg_ref[...]).astype(jnp.bfloat16)
            if padded:
                phi_out[...] = jnp.zeros_like(phi_out)
                g_out[...] = jnp.zeros_like(g_out)
            phi_out[0, 0:N4, :] = phi
            g_out[0, 0:N4, :] = g

    return kernel


# --------------------- kernel 2: attention + output conv + residual --------

def _make_attn_kernel(N4, N4P, bf16_exp):
    padded = N4P != N4

    def kernel(x_ref, phi_ref, g_ref, wt_ref, bt_ref, wo_ref, bo_ref, out_ref):
        x_t = x_ref[0]                                            # (TQ, C) f32
        xb = x_t.astype(jnp.bfloat16)

        # theta 1x1 conv for this query tile (channel-last -> standard matmul)
        theta = jnp.dot(xb, wt_ref[...],
                        preferred_element_type=jnp.float32) + bt_ref[...]

        # scores = theta @ phi_pooled -> (TQ, N4P)
        scores = jnp.dot(theta.astype(jnp.bfloat16), phi_ref[0],
                         preferred_element_type=jnp.float32)
        if padded:
            col = lax.broadcasted_iota(jnp.int32, (1, N4P), 1)
            scores = jnp.where(col < N4, scores, -1e30)           # mask pad keys

        # Stable softmax with deferred (flash-style) normalization.
        m = jnp.max(scores, axis=-1, keepdims=True)
        z = scores - m
        if bf16_exp:
            # v6e / v7x: bf16 EUP ~2x exp throughput; mask applied before cast.
            e = jnp.exp(z.astype(jnp.bfloat16))
            denom = jnp.sum(e, axis=-1, keepdims=True, dtype=jnp.float32)
        else:
            e32 = jnp.exp(z)
            denom = jnp.sum(e32, axis=-1, keepdims=True)
            e = e32.astype(jnp.bfloat16)

        # Unnormalized weights into the matmul; normalize the small result.
        attn_g = jnp.dot(e, g_ref[0],
                         preferred_element_type=jnp.float32)      # (TQ, C2)
        attn_g = attn_g * pl.reciprocal(denom, approx=True)

        # Output 1x1 conv (sigma pre-folded into wo/bo) + residual.
        o = jnp.dot(attn_g.astype(jnp.bfloat16), wo_ref[...],
                    preferred_element_type=jnp.float32) + bo_ref[...]
        out_ref[0] = (x_t + o).astype(out_ref.dtype)

    return kernel


# ------------------------------- wrapper ------------------------------------

def self_attn_forward(x, params, tq=None):
    B, C, H, W = x.shape
    assert C % 8 == 0 and H % 2 == 0 and W % 2 == 0
    N = H * W
    N4 = N // 4
    C8, C2 = C // 8, C // 2
    N4P = max(128, _round_up(N4, 128))          # lane-dense key axis

    cap = _vmem_capacity_bytes()
    if tq is None:
        max_tq = 1024 if cap >= 100 * 1024 * 1024 else 512
        tq = next((t for t in (1024, 512, 256, 128)
                   if t <= max_tq and N % t == 0), N)
    assert N % tq == 0, "query tile must divide N"
    assert tq == N or tq % 128 == 0, "query tile must be lane-dense"
    NQ = N // tq

    x = x.astype(jnp.float32)
    # Channel-last, natural query order (theta / residual / output path).
    x_nat = x.reshape(B, C, N).transpose(0, 2, 1)                 # (B, N, C) f32
    # Window-position-major channel-last layout for the pooled key path:
    # x_win[b, k, m, :] = x[b, :, 2i+dy, 2j+dx], k=(dy,dx), m=(i,j).
    x_win = (x.reshape(B, C, H // 2, 2, W // 2, 2)
              .transpose(0, 3, 5, 2, 4, 1)
              .reshape(B, 4, N4, C)
              .astype(jnp.bfloat16))
    # TODO(synk): if this op sits inside a larger model, carry the channel-last
    # layout across the op instead of re-permuting x / out on every call.

    wt, bt = params["theta"]
    wp, bp = params["phi"]
    wg, bg = params["g"]
    wo, bo = params["attn"]
    sigma = params["sigma"][0]

    wt_t = wt.T.astype(jnp.bfloat16)                              # (C, C8)
    bt_r = bt.reshape(1, C8).astype(jnp.float32)
    wp_t = wp.T.astype(jnp.bfloat16)                              # (C, C8)
    bp_r = bp.reshape(1, C8).astype(jnp.float32)
    wg_t = wg.T.astype(jnp.bfloat16)                              # (C, C2)
    bg_r = bg.reshape(1, C2).astype(jnp.float32)
    # Fold sigma into the output conv: out = x + (sigma*wo) @ attn_g + sigma*bo
    wo_t = (sigma * wo).T.astype(jnp.bfloat16)                    # (C2, C)
    bo_r = (sigma * bo).reshape(1, C).astype(jnp.float32)

    # ---------------- kernel 1: pooled phi / g ----------------
    k1_step_bytes = (2 * N4 * C * 2                 # x chunk, double-buffered
                     + 2 * N4P * (C8 + C2) * 2      # bf16 outputs
                     + 2 * N4 * (C8 + C2) * 4       # f32 accumulators + temps
                     + 2 * C * (C8 + C2) * 2)       # weights
    phi_raw, g_raw = pl.pallas_call(
        _make_pool_kernel(N4, N4P),
        out_shape=(jax.ShapeDtypeStruct((B, N4P, C8), jnp.bfloat16),
                   jax.ShapeDtypeStruct((B, N4P, C2), jnp.bfloat16)),
        grid=(B, 4),
        in_specs=[
            pl.BlockSpec((1, 1, N4, C), lambda b, k: (b, k, 0, 0)),
            _full_spec(wp_t), _full_spec(bp_r),
            _full_spec(wg_t), _full_spec(bg_r),
        ],
        out_specs=(pl.BlockSpec((1, N4P, C8), lambda b, k: (b, 0, 0)),
                   pl.BlockSpec((1, N4P, C2), lambda b, k: (b, 0, 0))),
        scratch_shapes=[pltpu.VMEM((N4, C8), jnp.float32),
                        pltpu.VMEM((N4, C2), jnp.float32)],
        compiler_params=pltpu.CompilerParams(
            dimension_semantics=("parallel", "arbitrary"),
            vmem_limit_bytes=_vmem_limit(k1_step_bytes, cap)),
    )(x_win, wp_t, bp_r, wg_t, bg_r)

    # Tiny once-per-call relayout so the scores matmul RHS is a standard
    # (C8, keys) operand; avoids any per-tile transpose inside the kernel.
    phi_cf = jnp.swapaxes(phi_raw, 1, 2)                          # (B, C8, N4P)

    # ---------------- kernel 2: attention ----------------
    bf16_exp = _has_bf16_vector_units()
    k2_step_bytes = (2 * 2 * tq * C * 4                       # x + out tiles
                     + 2 * C8 * N4P * 2 + 2 * N4P * C2 * 2    # phi + g
                     + 2 * (C * C8 + C2 * C) * 2 + 2 * (C8 + C) * 4
                     + tq * N4P * (4 + (2 if bf16_exp else 4))  # scores + e
                     + tq * (C8 + C2 + 2 * C) * 4)              # small temps
    out_nat = pl.pallas_call(
        _make_attn_kernel(N4, N4P, bf16_exp),
        out_shape=jax.ShapeDtypeStruct((B, N, C), jnp.float32),
        grid=(B, NQ),
        in_specs=[
            pl.BlockSpec((1, tq, C), lambda b, q: (b, q, 0)),
            pl.BlockSpec((1, C8, N4P), lambda b, q: (b, 0, 0)),
            pl.BlockSpec((1, N4P, C2), lambda b, q: (b, 0, 0)),
            _full_spec(wt_t), _full_spec(bt_r),
            _full_spec(wo_t), _full_spec(bo_r),
        ],
        out_specs=pl.BlockSpec((1, tq, C), lambda b, q: (b, q, 0)),
        compiler_params=pltpu.CompilerParams(
            dimension_semantics=("parallel", "parallel"),
            vmem_limit_bytes=_vmem_limit(k2_step_bytes, cap)),
    )(x_nat, phi_cf, g_raw, wt_t, bt_r, wo_t, bo_r)

    return out_nat.transpose(0, 2, 1).reshape(B, C, H, W)


# ---------------- parameter init (deterministic, in-script) ----------------

def _spectral_normalize(w, n_iter=30):
    # spectral_norm is a weight reparametrization: w / sigma_max(w). Done in
    # plain JAX glue (power iteration), not in the kernel.
    wm = w.reshape(w.shape[0], -1)
    u = jnp.ones((wm.shape[0],), jnp.float32)
    v = jnp.ones((wm.shape[1],), jnp.float32)
    for _ in range(n_iter):
        v = wm.T @ u
        v = v / (jnp.linalg.norm(v) + 1e-12)
        u = wm @ v
        u = u / (jnp.linalg.norm(u) + 1e-12)
    s = u @ (wm @ v)
    return w / s


def init_params(key, C):
    C8, C2 = C // 8, C // 2
    ks = jax.random.split(key, 8)

    def conv1x1_params(kw, kb, cout, cin):
        w = jax.random.normal(kw, (cout, cin), jnp.float32) / jnp.sqrt(cin)
        b = jax.random.normal(kb, (cout,), jnp.float32) * 0.01
        return _spectral_normalize(w), b

    return {
        "theta": conv1x1_params(ks[0], ks[1], C8, C),
        "phi":   conv1x1_params(ks[2], ks[3], C8, C),
        "g":     conv1x1_params(ks[4], ks[5], C2, C),
        "attn":  conv1x1_params(ks[6], ks[7], C, C2),
        # PyTorch inits sigma = 0 (which makes out == x); use a nonzero
        # deterministic value so the attention path is actually exercised.
        "sigma": jnp.array([0.5], jnp.float32),
    }


# ---------------- pure-JAX reference (for correctness check) ----------------

def ref_forward(x, params):
    B, C, H, W = x.shape

    def conv1x1(y, w, b):
        return jnp.einsum('oc,bchw->bohw', w, y) + b[None, :, None, None]

    def maxpool2x2(y):
        b_, c_, h_, w_ = y.shape
        return y.reshape(b_, c_, h_ // 2, 2, w_ // 2, 2).max(axis=(3, 5))

    wt, bt = params["theta"]
    wp, bp = params["phi"]
    wg, bg = params["g"]
    wo, bo = params["attn"]
    sigma = params["sigma"][0]

    theta = conv1x1(x, wt, bt).reshape(B, C // 8, H * W)
    phi = maxpool2x2(conv1x1(x, wp, bp)).reshape(B, C // 8, H * W // 4)
    attn = jax.nn.softmax(jnp.einsum('bcn,bcm->bnm', theta, phi), axis=-1)
    g = maxpool2x2(conv1x1(x, wg, bg)).reshape(B, C // 2, H * W // 4)
    attn_g = jnp.einsum('bcm,bnm->bcn', g, attn).reshape(B, C // 2, H, W)
    attn_g = conv1x1(attn_g, wo, bo)
    return x + sigma * attn_g


if __name__ == "__main__":
    B, C, H, W = 2, 16, 16, 16        # C must be divisible by 8
    key = jax.random.PRNGKey(0)
    kx, kp = jax.random.split(key)
    x = jax.random.normal(kx, (B, C, H, W), jnp.float32)
    params = init_params(kp, C)

    out = self_attn_forward(x, params, tq=128)   # tq=128 exercises query tiling
    out = jax.block_until_ready(out)

    ref = ref_forward(x, params)                  # full-f32 reference
    assert out.shape == (B, C, H, W)
    err = jnp.max(jnp.abs(out - ref))
    # bf16 MXU inputs + approx (EUP) reciprocal everywhere; on v6e/v7x the
    # softmax exponent is additionally computed in bf16 -> looser tolerance.
    tol = 6e-2 if _has_bf16_vector_units() else 3e-2
    assert jnp.allclose(out, ref, rtol=tol, atol=tol), f"max abs err {err}"
    print("KERNEL_OK")
</pallas_src>

<mosaic_0001>
module attributes {stable_mosaic.version = 11 : i64} {
  func.func @kernel(%arg0: i32, %arg1: i32, %arg2: memref<1x1x64x16xbf16, #tpu.memory_space<vmem>>, %arg3: memref<16x2xbf16, #tpu.memory_space<vmem>>, %arg4: memref<1x2xf32, #tpu.memory_space<vmem>>, %arg5: memref<16x8xbf16, #tpu.memory_space<vmem>>, %arg6: memref<1x8xf32, #tpu.memory_space<vmem>>, %arg7: memref<1x128x2xbf16, #tpu.memory_space<vmem>>, %arg8: memref<1x128x8xbf16, #tpu.memory_space<vmem>>, %arg9: memref<64x2xf32, #tpu.memory_space<vmem>>, %arg10: memref<64x8xf32, #tpu.memory_space<vmem>>) attributes {dimension_semantics = [#tpu.dimension_semantics<parallel>, #tpu.dimension_semantics<arbitrary>], iteration_bounds = array<i64: 2, 4>, scalar_prefetch = 0 : i64, scratch_operands = 2 : i64, tpu.core_type = #tpu.core_type<tc>, window_params = [{transform_indices = @transform_0, window_bounds = array<i64: 1, 1, 64, 16>}, {pipeline_mode = #tpu.pipeline_mode<synchronous>, transform_indices = @transform_1, window_bounds = array<i64: 16, 2>}, {pipeline_mode = #tpu.pipeline_mode<synchronous>, transform_indices = @transform_2, window_bounds = array<i64: 1, 2>}, {pipeline_mode = #tpu.pipeline_mode<synchronous>, transform_indices = @transform_3, window_bounds = array<i64: 16, 8>}, {pipeline_mode = #tpu.pipeline_mode<synchronous>, transform_indices = @transform_4, window_bounds = array<i64: 1, 8>}, {transform_indices = @transform_5, window_bounds = array<i64: 1, 128, 2>}, {transform_indices = @transform_6, window_bounds = array<i64: 1, 128, 8>}]} {
    %c0 = arith.constant 0 : index
    %c0_0 = arith.constant 0 : index
    %c0_1 = arith.constant 0 : index
    %c0_2 = arith.constant 0 : index
    %0 = vector.load %arg2[%c0, %c0_0, %c0_1, %c0_2] : memref<1x1x64x16xbf16, #tpu.memory_space<vmem>>, vector<1x1x64x16xbf16>
    %1 = vector.shape_cast %0 : vector<1x1x64x16xbf16> to vector<64x16xbf16>
    %c0_3 = arith.constant 0 : index
    %c0_4 = arith.constant 0 : index
    %2 = vector.load %arg3[%c0_3, %c0_4] : memref<16x2xbf16, #tpu.memory_space<vmem>>, vector<16x2xbf16>
    %cst = arith.constant dense<0.000000e+00> : vector<64x2xf32>
    %3 = tpu.matmul %1, %2, %cst {dimension_numbers = #tpu.dot_dimension_numbers<[1], [0], [0], [1], [0, 0, 1, 1], [], []>} : vector<64x16xbf16>, vector<16x2xbf16>, vector<64x2xf32> -> vector<64x2xf32>
    %c0_5 = arith.constant 0 : index
    %c0_6 = arith.constant 0 : index
    %4 = vector.load %arg5[%c0_5, %c0_6] : memref<16x8xbf16, #tpu.memory_space<vmem>>, vector<16x8xbf16>
    %cst_7 = arith.constant dense<0.000000e+00> : vector<64x8xf32>
    %5 = tpu.matmul %1, %4, %cst_7 {dimension_numbers = #tpu.dot_dimension_numbers<[1], [0], [0], [1], [0, 0, 1, 1], [], []>} : vector<64x16xbf16>, vector<16x8xbf16>, vector<64x8xf32> -> vector<64x8xf32>
    %c0_i32 = arith.constant 0 : i32
    %6 = arith.cmpi eq, %arg1, %c0_i32 : i32
    %7 = arith.extui %6 : i1 to i32
    %c0_i32_8 = arith.constant 0 : i32
    %8 = arith.cmpi ne, %7, %c0_i32_8 : i32
    scf.if %8 {
      %cst_18 = arith.constant 0xFF800000 : f32
      %18 = vector.broadcast %cst_18 : f32 to vector<64x2xf32>
      %c0_19 = arith.constant 0 : index
      %c0_20 = arith.constant 0 : index
      %19 = vector.load %arg9[%c0_19, %c0_20] : memref<64x2xf32, #tpu.memory_space<vmem>>, vector<64x2xf32>
      tpu.vector_store %arg9[%c0_19, %c0_20], %18 {strides = array<i32>} : memref<64x2xf32, #tpu.memory_space<vmem>>, vector<64x2xf32>,
      %cst_21 = arith.constant 0xFF800000 : f32
      %20 = vector.broadcast %cst_21 : f32 to vector<64x8xf32>
      %c0_22 = arith.constant 0 : index
      %c0_23 = arith.constant 0 : index
      %21 = vector.load %arg10[%c0_22, %c0_23] : memref<64x8xf32, #tpu.memory_space<vmem>>, vector<64x8xf32>
      tpu.vector_store %arg10[%c0_22, %c0_23], %20 {strides = array<i32>} : memref<64x8xf32, #tpu.memory_space<vmem>>, vector<64x8xf32>,
    } else {
    }
    %c0_9 = arith.constant 0 : index
    %c0_10 = arith.constant 0 : index
    %9 = vector.load %arg9[%c0_9, %c0_10] : memref<64x2xf32, #tpu.memory_space<vmem>>, vector<64x2xf32>
    %10 = arith.maximumf %9, %3 : vector<64x2xf32>
    %c0_11 = arith.constant 0 : index
    %c0_12 = arith.constant 0 : index
    %11 = vector.load %arg9[%c0_11, %c0_12] : memref<64x2xf32, #tpu.memory_space<vmem>>, vector<64x2xf32>
    tpu.vector_store %arg9[%c0_11, %c0_12], %10 {strides = array<i32>} : memref<64x2xf32, #tpu.memory_space<vmem>>, vector<64x2xf32>,
    %c0_13 = arith.constant 0 : index
    %c0_14 = arith.constant 0 : index
    %12 = vector.load %arg10[%c0_13, %c0_14] : memref<64x8xf32, #tpu.memory_space<vmem>>, vector<64x8xf32>
    %13 = arith.maximumf %12, %5 : vector<64x8xf32>
    %c0_15 = arith.constant 0 : index
    %c0_16 = arith.constant 0 : index
    %14 = vector.load %arg10[%c0_15, %c0_16] : memref<64x8xf32, #tpu.memory_space<vmem>>, vector<64x8xf32>
    tpu.vector_store %arg10[%c0_15, %c0_16], %13 {strides = array<i32>} : memref<64x8xf32, #tpu.memory_space<vmem>>, vector<64x8xf32>,
    %c3_i32 = arith.constant 3 : i32
    %15 = arith.cmpi eq, %arg1, %c3_i32 : i32
    %16 = arith.extui %15 : i1 to i32
    %c0_i32_17 = arith.constant 0 : i32
    %17 = arith.cmpi ne, %16, %c0_i32_17 : i32
    scf.if %17 {
      %c0_18 = arith.constant 0 : index
      %c0_19 = arith.constant 0 : index
      %18 = vector.load %arg9[%c0_18, %c0_19] : memref<64x2xf32, #tpu.memory_space<vmem>>, vector<64x2xf32>
      %c0_20 = arith.constant 0 : index
      %c0_21 = arith.constant 0 : index
      %19 = vector.load %arg4[%c0_20, %c0_21] : memref<1x2xf32, #tpu.memory_space<vmem>>, vector<1x2xf32>
      %20 = vector.broadcast %19 : vector<1x2xf32> to vector<64x2xf32>
      %21 = arith.addf %18, %20 : vector<64x2xf32>
      %22 = arith.truncf %21 : vector<64x2xf32> to vector<64x2xbf16>
      %c0_22 = arith.constant 0 : index
      %c0_23 = arith.constant 0 : index
      %23 = vector.load %arg10[%c0_22, %c0_23] : memref<64x8xf32, #tpu.memory_space<vmem>>, vector<64x8xf32>
      %c0_24 = arith.constant 0 : index
      %c0_25 = arith.constant 0 : index
      %24 = vector.load %arg6[%c0_24, %c0_25] : memref<1x8xf32, #tpu.memory_space<vmem>>, vector<1x8xf32>
      %25 = vector.broadcast %24 : vector<1x8xf32> to vector<64x8xf32>
      %26 = arith.addf %23, %25 : vector<64x8xf32>
      %27 = arith.truncf %26 : vector<64x8xf32> to vector<64x8xbf16>
      %cst_26 = arith.constant 0.000000e+00 : bf16
      %28 = vector.broadcast %cst_26 : bf16 to vector<1x128x2xbf16>
      %c0_27 = arith.constant 0 : index
      %c0_28 = arith.constant 0 : index
      %c0_29 = arith.constant 0 : index
      %29 = vector.load %arg7[%c0_27, %c0_28, %c0_29] : memref<1x128x2xbf16, #tpu.memory_space<vmem>>, vector<1x128x2xbf16>
      tpu.vector_store %arg7[%c0_27, %c0_28, %c0_29], %28 {strides = array<i32>} : memref<1x128x2xbf16, #tpu.memory_space<vmem>>, vector<1x128x2xbf16>,
      %cst_30 = arith.constant 0.000000e+00 : bf16
      %30 = vector.broadcast %cst_30 : bf16 to vector<1x128x8xbf16>
      %c0_31 = arith.constant 0 : index
      %c0_32 = arith.constant 0 : index
      %c0_33 = arith.constant 0 : index
      %31 = vector.load %arg8[%c0_31, %c0_32, %c0_33] : memref<1x128x8xbf16, #tpu.memory_space<vmem>>, vector<1x128x8xbf16>
      tpu.vector_store %arg8[%c0_31, %c0_32, %c0_33], %30 {strides = array<i32>} : memref<1x128x8xbf16, #tpu.memory_space<vmem>>, vector<1x128x8xbf16>,
      %c0_34 = arith.constant 0 : index
      %c0_35 = arith.constant 0 : index
      %c0_36 = arith.constant 0 : index
      %32 = vector.load %arg7[%c0_34, %c0_35, %c0_36] : memref<1x128x2xbf16, #tpu.memory_space<vmem>>, vector<1x64x2xbf16>
      %33 = vector.shape_cast %32 : vector<1x64x2xbf16> to vector<64x2xbf16>
      %34 = vector.shape_cast %22 : vector<64x2xbf16> to vector<1x64x2xbf16>
      tpu.vector_store %arg7[%c0_34, %c0_35, %c0_36], %34 {strides = array<i32>} : memref<1x128x2xbf16, #tpu.memory_space<vmem>>, vector<1x64x2xbf16>,
      %c0_37 = arith.constant 0 : index
      %c0_38 = arith.constant 0 : index
      %c0_39 = arith.constant 0 : index
      %35 = vector.load %arg8[%c0_37, %c0_38, %c0_39] : memref<1x128x8xbf16, #tpu.memory_space<vmem>>, vector<1x64x8xbf16>
      %36 = vector.shape_cast %35 : vector<1x64x8xbf16> to vector<64x8xbf16>
      %37 = vector.shape_cast %27 : vector<64x8xbf16> to vector<1x64x8xbf16>
      tpu.vector_store %arg8[%c0_37, %c0_38, %c0_39], %37 {strides = array<i32>} : memref<1x128x8xbf16, #tpu.memory_space<vmem>>, vector<1x64x8xbf16>,
    } else {
    }
    return
  }
  func.func @transform_0(%arg0: i32, %arg1: i32) -> (i32, i32, i32, i32) {
    %c0_i32 = arith.constant 0 : i32
    %c0_i32_0 = arith.constant 0 : i32
    %c0_i32_1 = arith.constant 0 : i32
    return %arg0, %arg1, %c0_i32, %c0_i32_0 : i32, i32, i32, i32
  }
  func.func @transform_1(%arg0: i32, %arg1: i32) -> (i32, i32) {
    %c0_i32 = arith.constant 0 : i32
    %c0_i32_0 = arith.constant 0 : i32
    %c0_i32_1 = arith.constant 0 : i32
    return %c0_i32, %c0_i32_0 : i32, i32
  }
  func.func @transform_2(%arg0: i32, %arg1: i32) -> (i32, i32) {
    %c0_i32 = arith.constant 0 : i32
    %c0_i32_0 = arith.constant 0 : i32
    %c0_i32_1 = arith.constant 0 : i32
    return %c0_i32, %c0_i32_0 : i32, i32
  }
  func.func @transform_3(%arg0: i32, %arg1: i32) -> (i32, i32) {
    %c0_i32 = arith.constant 0 : i32
    %c0_i32_0 = arith.constant 0 : i32
    %c0_i32_1 = arith.constant 0 : i32
    return %c0_i32, %c0_i32_0 : i32, i32
  }
  func.func @transform_4(%arg0: i32, %arg1: i32) -> (i32, i32) {
    %c0_i32 = arith.constant 0 : i32
    %c0_i32_0 = arith.constant 0 : i32
    %c0_i32_1 = arith.constant 0 : i32
    return %c0_i32, %c0_i32_0 : i32, i32
  }
  func.func @transform_5(%arg0: i32, %arg1: i32) -> (i32, i32, i32) {
    %c0_i32 = arith.constant 0 : i32
    %c0_i32_0 = arith.constant 0 : i32
    %c0_i32_1 = arith.constant 0 : i32
    return %arg0, %c0_i32, %c0_i32_0 : i32, i32, i32
  }
  func.func @transform_6(%arg0: i32, %arg1: i32) -> (i32, i32, i32) {
    %c0_i32 = arith.constant 0 : i32
    %c0_i32_0 = arith.constant 0 : i32
    %c0_i32_1 = arith.constant 0 : i32
    return %arg0, %c0_i32, %c0_i32_0 : i32, i32, i32
  }
}

</mosaic_0001>

<bundles_post_ra>
// kernel: tpu_custom_call.1
= control target key start
LH: loop header
LB: loop body
LE: loop exit
PB: predicated region body
PF: predicated region fallthrough
CT: control target
= control target key end

     0   :  { %s876_s21 = smov 0   ;;  %s878_s22 = smov 0   ;;  %s1088_s0 = inlined_call_operand.vmem [shape: bf16[2,4,64,16], index: 0, kind: input, shape index: {}]   ;;  %s1089_s1 = inlined_call_operand.vmem [shape: bf16[16,2], index: 1, kind: input, shape index: {}]   ;;  %s1090_s2 = inlined_call_operand.vmem [shape: f32[1,2], index: 2, kind: input, shape index: {}]   ;;  %s1091_s3 = inlined_call_operand.vmem [shape: bf16[16,8], index: 3, kind: input, shape index: {}]   ;;  %s1092_s4 = inlined_call_operand.vmem [shape: f32[1,8], index: 4, kind: input, shape index: {}]   ;;  %s1093_s5 = inlined_call_operand.vmem [shape: bf16[2,128,2], index: 5, kind: output, shape index: {0}]   ;;  %s1094_s6 = inlined_call_operand.vmem [shape: bf16[2,128,8], index: 6, kind: output, shape index: {1}]  }
   0x1   :  { %s880_s23 = smov 0   ;;  %s882_s24 = smov 0  }
   0x2   :  { %s884_s25 = smov 0  }
   0x3 LB: > { %s26_s26 = sadd.s32 1, %s829_s23  ;;  %s29_s27 = sadd.s32 1, %s833_s24  ;;  %s837_s25 = sphi %s884_s25, %s17_s25   ;;  %s833_s24 = sphi %s882_s24, %s1098_s24   ;;  %s829_s23 = sphi %s880_s23, %s1097_s23   ;;  %s825_s22 = sphi %s878_s22, %s1096_s22   ;;  %s821_s21 = sphi %s876_s21, %s1095_s21  }
   0x4   : > { %p27_p0 = scmp.ge.s32.totalorder %s26_s26, 4  ;;  %p701_p1 = scmp.ge.s32.totalorder %s837_s25, 1 }
   0x5   : > { %p233_p2 = scmp.lt.s32.totalorder %s837_s25, 9 }
   0x6   : > { %s1100_s26 = smov (%p27_p0, %s26_s26), 0  ;;  %s1102_s27 = smov (!%p27_p0, %s29_s27), %s833_s24 }
   0x7   : > { %p234_p3 = pnand %p701_p1, %p233_p2  ;;  %p31_p4 = scmp.ge.s32.totalorder %s1102_s27, 2 }
   0x8   : > { %p272_p5 = scmp.lt.s32.totalorder (!%p234_p3), %s825_s22, 1  ;;  %p274_p6 = scmp.lt.s32.totalorder (!%p234_p3), %s821_s21, 3 }
   0x9   : > { %s1104_s27 = smov (%p31_p4, %s1102_s27), 0  ;;  %237 = sbr.rel (%p234_p3) target bundleno = 264 (0x108), region = 40 }
   0xa   : > { %p741_p7 = scmp.ne.s32.totalorder (!%p234_p3), %s821_s21, 0 }
   0xe   : > { %v751_v0 = vld [vmem:[%s1089_s1] sm:$0xff]  ;;  %s1106_s22 = smov (!%p272_p5, %s825_s22), 1  ;;  %vm328_vm0 = vcmask 130048  }
   0xf   : > { %v752_v1 = vld [vmem:[%s1091_s3] sm:$0xff]  ;;  %348 = vmatpush.bf16.msra.mxu0 %v751_v0  ;;  %753 = vmatpush.bf16.msra.mxu2 %v751_v0  ;;  %s275_s8 = scalar_select %p274_p6, %s821_s21, 3 }
  0x10   : > { %385 = vmatpush.bf16.msra.mxu1 %v752_v1  ;;  %754 = vmatpush.bf16.msra.mxu3 %v752_v1  ;;  %s703_s9 = sshll.u32 %s1106_s22, 5  ;;  %s745_s10 = sshll.u32 %s1106_s22, 6 }
  0x11   : > { %s702_s11 = sshll.u32 %s275_s8, 3  ;;  %s919_s14 = scalar_lea.vmem %s1093_s5, %s745_s10 }
  0x12   : > { %s278_s15 = sadd.s32 %s703_s9, %s702_s11  ;;  %s924_s18 = scalar_lea.vmem %s1094_s6, %s745_s10 }
  0x13   : > { %s704_s19 = sshll.u32 %s278_s15, 2 }
  0x14   : > { %s280_s29 = scalar_lea.vmem %s1088_s0, %s704_s19 }
  0x15   : > { %v747_v2 = vld [vmem:[%s280_s29] sm:$0xff]  ;;  %v749_v3 = vld [vmem:[%s280_s29 + $0x10] sm:$0xff]  ;;  %v748_v4 = vld [vmem:[%s280_s29 + $0x8] sm:$0xff] }
  0x16   : > { %729 = vmatmul.msk.bf16.vlgmr.msra.gmra.mxu0 %vm328_vm0, %v747_v2  ;;  %731 = vmatmul.msk.bf16.vlgmr.msra.gmra.mxu2 %vm328_vm0, %v749_v3  ;;  %v750_v5 = vld [vmem:[%s280_s29 + $0x18] sm:$0xff] }
  0x17   : > { %737 = vmatmul.msk.bf16.vlgmr.msra.gmra.mxu1 %vm328_vm0, %v747_v2  ;;  %739 = vmatmul.msk.bf16.vlgmr.msra.gmra.mxu3 %vm328_vm0, %v749_v3 }
  0x26   : > { %730 = vmatmul.msk.bf16.gmra.mxu0 %vm328_vm0, %v748_v4  ;;  %732 = vmatmul.msk.bf16.gmra.mxu2 %vm328_vm0, %v750_v5 }
  0x27   : > { %738 = vmatmul.msk.bf16.gmra.mxu1 %vm328_vm0, %v748_v4  ;;  %740 = vmatmul.msk.bf16.gmra.mxu3 %vm328_vm0, %v750_v5 }
  0x93   : > { %v350_v6 = vpop.f32.mrf.mxu0 }
  0x94   : > { %v929_v7 = vpop.f32.mrf.mxu1 }
  0x99   : > { %v360_v8 = vpop.f32.mrf.mxu2 }
  0x9a   : > { %v931_v9 = vpop.f32.mrf.mxu3 }
  0x9b   : > { %v352_v10 = vpop.f32.mrf.mxu0 }
  0x9c   : > { %v933_v11 = vpop.f32.mrf.mxu1 }
  0xa1   : > { %v362_v12 = vpop.f32.mrf.mxu2 }
  0xa2   : > { %v935_v13 = vpop.f32.mrf.mxu3 }
  0xa3   : > { %v355_v14 = vpop.f32.mrf.mxu0 }
  0xa4   : > { %v937_v15 = vpop.f32.mrf.mxu1 }
  0xa9   : > { %v365_v16 = vpop.f32.mrf.mxu2 }
  0xaa   : > { %v939_v17 = vpop.f32.mrf.mxu3 }
  0xab   : > { %v357_v18 = vpop.f32.mrf.mxu0 }
  0xac   : > { %v941_v19 = vpop.f32.mrf.mxu1 }
  0xae   : > { %410 = sbr.rel (%p741_p7) target bundleno = 196 (0xc4), region = 44 }
  0xb1   : > { %v367_v20 = vpop.f32.mrf.mxu2 }
  0xb2   : > { %v943_v21 = vpop.f32.mrf.mxu3 }
  0xb3   : > { %vm411_vm1 = vcmask 15360   ;;  %v839_v22 = vmov -inf   ;;  %vm420_vm2 = vcmask 64512  }
  0xb4   : > { %412 = vst.msk [vmem:[#allocation2] sm:$0xff] %vm411_vm1, %v839_v22 }
  0xb5   : > { %413 = vst.msk [vmem:[#allocation2 + $0x8] sm:$0xff] %vm411_vm1, %v839_v22 }
  0xb6   : > { %414 = vst.msk [vmem:[#allocation2 + $0x10] sm:$0xff] %vm411_vm1, %v839_v22 }
  0xb7   : > { %415 = vst.msk [vmem:[#allocation2 + $0x18] sm:$0xff] %vm411_vm1, %v839_v22 }
  0xb8   : > { %416 = vst.msk [vmem:[#allocation2 + $0x20] sm:$0xff] %vm411_vm1, %v839_v22 }
  0xb9   : > { %417 = vst.msk [vmem:[#allocation2 + $0x28] sm:$0xff] %vm411_vm1, %v839_v22 }
  0xba   : > { %418 = vst.msk [vmem:[#allocation2 + $0x30] sm:$0xff] %vm411_vm1, %v839_v22 }
  0xbb   : > { %419 = vst.msk [vmem:[#allocation2 + $0x38] sm:$0xff] %vm411_vm1, %v839_v22 }
  0xbc   : > { %421 = vst.msk [vmem:[#allocation3] sm:$0xff] %vm420_vm2, %v839_v22 }
  0xbd   : > { %422 = vst.msk [vmem:[#allocation3 + $0x8] sm:$0xff] %vm420_vm2, %v839_v22 }
  0xbe   : > { %423 = vst.msk [vmem:[#allocation3 + $0x10] sm:$0xff] %vm420_vm2, %v839_v22 }
  0xbf   : > { %424 = vst.msk [vmem:[#allocation3 + $0x18] sm:$0xff] %vm420_vm2, %v839_v22 }
  0xc0   : > { %425 = vst.msk [vmem:[#allocation3 + $0x20] sm:$0xff] %vm420_vm2, %v839_v22 }
  0xc1   : > { %426 = vst.msk [vmem:[#allocation3 + $0x28] sm:$0xff] %vm420_vm2, %v839_v22 }
  0xc2   : > { %427 = vst.msk [vmem:[#allocation3 + $0x30] sm:$0xff] %vm420_vm2, %v839_v22 }
  0xc3   : > { %428 = vst.msk [vmem:[#allocation3 + $0x38] sm:$0xff] %vm420_vm2, %v839_v22 }
  0xc4 PF: > { %v429_v23 = vld [vmem:[#allocation2] sm:$0xff]  ;;  %vm445_vm3 = vcmask 15360   ;;  %v430_v24 = vld [vmem:[#allocation2 + $0x8] sm:$0xff]  ;;  %v431_v25 = vld [vmem:[#allocation2 + $0x10] sm:$0xff]  ;;  %vm470_vm4 = vcmask 64512   ;;  %p742_p8 = scmp.ne.s32.totalorder %s821_s21, 3 }
  0xc5   : > { %v437_v26 = vmax.f32 %v429_v23, %v350_v6  ;;  %v438_v27 = vmax.f32 %v430_v24, %v352_v10  ;;  %v439_v28 = vmax.f32 %v431_v25, %v355_v14  ;;  %v432_v29 = vld [vmem:[#allocation2 + $0x18] sm:$0xff]  ;;  %v433_v30 = vld [vmem:[#allocation2 + $0x20] sm:$0xff]  ;;  %v434_v31 = vld [vmem:[#allocation2 + $0x28] sm:$0xff] }
  0xc6   : > { %v440_v32 = vmax.f32 %v432_v29, %v357_v18  ;;  %v435_v33 = vld [vmem:[#allocation2 + $0x30] sm:$0xff]  ;;  %v441_v34 = vmax.f32 %v433_v30, %v360_v8  ;;  %v436_v35 = vld [vmem:[#allocation2 + $0x38] sm:$0xff]  ;;  %v442_v36 = vmax.f32 %v434_v31, %v362_v12  ;;  %v454_v37 = vld [vmem:[#allocation3] sm:$0xff] }
  0xc7   : > { %446 = vst.msk [vmem:[#allocation2] sm:$0xff] %vm445_vm3, %v437_v26  ;;  %v443_v38 = vmax.f32 %v435_v33, %v365_v16  ;;  %v455_v39 = vld [vmem:[#allocation3 + $0x8] sm:$0xff]  ;;  %v444_v40 = vmax.f32 %v436_v35, %v367_v20  ;;  %v456_v41 = vld [vmem:[#allocation3 + $0x10] sm:$0xff]  ;;  %v462_v42 = vmax.f32 %v454_v37, %v929_v7  ;;  %v457_v43 = vld [vmem:[#allocation3 + $0x18] sm:$0xff] }
  0xc8   : > { %447 = vst.msk [vmem:[#allocation2 + $0x8] sm:$0xff] %vm445_vm3, %v438_v27  ;;  %v463_v44 = vmax.f32 %v455_v39, %v933_v11  ;;  %v458_v45 = vld [vmem:[#allocation3 + $0x20] sm:$0xff]  ;;  %v464_v46 = vmax.f32 %v456_v41, %v937_v15  ;;  %v459_v47 = vld [vmem:[#allocation3 + $0x28] sm:$0xff]  ;;  %v465_v48 = vmax.f32 %v457_v43, %v941_v19 }
  0xc9   : > { %448 = vst.msk [vmem:[#allocation2 + $0x10] sm:$0xff] %vm445_vm3, %v439_v28  ;;  %v460_v49 = vld [vmem:[#allocation3 + $0x30] sm:$0xff]  ;;  %v466_v50 = vmax.f32 %v458_v45, %v931_v9  ;;  %v467_v52 = vmax.f32 %v459_v47, %v935_v13 }
  0xca   : > { %449 = vst.msk [vmem:[#allocation2 + $0x18] sm:$0xff] %vm445_vm3, %v440_v32  ;;  %v461_v51 = vld [vmem:[#allocation3 + $0x38] sm:$0xff]  ;;  %v468_v53 = vmax.f32 %v460_v49, %v939_v17 }
  0xcb   : > { %450 = vst.msk [vmem:[#allocation2 + $0x20] sm:$0xff] %vm445_vm3, %v441_v34  ;;  %v469_v54 = vmax.f32 %v461_v51, %v943_v21 }
  0xcc   : > { %451 = vst.msk [vmem:[#allocation2 + $0x28] sm:$0xff] %vm445_vm3, %v442_v36 }
  0xcd   : > { %452 = vst.msk [vmem:[#allocation2 + $0x30] sm:$0xff] %vm445_vm3, %v443_v38 }
  0xce   : > { %453 = vst.msk [vmem:[#allocation2 + $0x38] sm:$0xff] %vm445_vm3, %v444_v40 }
  0xcf   : > { %471 = vst.msk [vmem:[#allocation3] sm:$0xff] %vm470_vm4, %v462_v42 }
  0xd0   : > { %472 = vst.msk [vmem:[#allocation3 + $0x8] sm:$0xff] %vm470_vm4, %v463_v44 }
  0xd1   : > { %473 = vst.msk [vmem:[#allocation3 + $0x10] sm:$0xff] %vm470_vm4, %v464_v46 }
  0xd2   : > { %474 = vst.msk [vmem:[#allocation3 + $0x18] sm:$0xff] %vm470_vm4, %v465_v48  ;;  %482 = sbr.rel (%p742_p8) target bundleno = 264 (0x108), region = 48 }
  0xd3   : > { %475 = vst.msk [vmem:[#allocation3 + $0x20] sm:$0xff] %vm470_vm4, %v466_v50 }
  0xd4   : > { %476 = vst.msk [vmem:[#allocation3 + $0x28] sm:$0xff] %vm470_vm4, %v467_v52 }
  0xd5   : > { %477 = vst.msk [vmem:[#allocation3 + $0x30] sm:$0xff] %vm470_vm4, %v468_v53 }
  0xd6   : > { %478 = vst.msk [vmem:[#allocation3 + $0x38] sm:$0xff] %vm470_vm4, %v469_v54 }
  0xd7   : > { %vm539_vm5 = vcmask 11264   ;;  %v840_v55 = vmov 0   ;;  %vm556_vm6 = vcmask 60416   ;;  %v797_v56 = vld [vmem:[%s1090_s2] ss:$0 sm:$0xff]  ;;  %v484_v58 = vld [vmem:[#allocation2 + $0x8] sm:$0xff] }
  0xd8   : > { %540 = vst.msk [vmem:[%s919_s14] sm:$0xf] %vm539_vm5, %v840_v55  ;;  %v483_v57 = vld [vmem:[#allocation2] sm:$0xff]  ;;  %v485_v59 = vld [vmem:[#allocation2 + $0x10] sm:$0xff]  ;;  %v486_v61 = vld [vmem:[#allocation2 + $0x18] sm:$0xff]  ;;  %v496_v62 = vadd.f32 %v797_v56, %v484_v58 }
  0xd9   : > { %541 = vst.msk [vmem:[%s919_s14 + $0x4] sm:$0xf] %vm539_vm5, %v840_v55  ;;  %v495_v60 = vadd.f32 %v797_v56, %v483_v57  ;;  %v487_v63 = vld [vmem:[#allocation2 + $0x20] sm:$0xff]  ;;  %v497_v0 = vadd.f32 %v797_v56, %v485_v59  ;;  %v488_v1 = vld [vmem:[#allocation2 + $0x28] sm:$0xff]  ;;  %v498_v2 = vadd.f32 %v797_v56, %v486_v61  ;;  %v489_v3 = vld [vmem:[#allocation2 + $0x30] sm:$0xff] }
  0xda   : > { %542 = vst.msk [vmem:[%s919_s14 + $0x8] sm:$0xf] %vm539_vm5, %v840_v55  ;;  %v499_v5 = vadd.f32 %v797_v56, %v487_v63  ;;  %v490_v6 = vld [vmem:[#allocation2 + $0x38] sm:$0xff]  ;;  %v798_v7 = vld [vmem:[%s1092_s4] ss:$0 sm:$0xff]  ;;  %v504_v8 = vpack.c.bf16 %v496_v62, %v496_v62  ;;  %v500_v9 = vadd.f32 %v797_v56, %v488_v1  ;;  %v501_v12 = vadd.f32 %v797_v56, %v489_v3  ;;  %v512_v13 = vld [vmem:[#allocation3 + $0x8] sm:$0xff] }
  0xdb   : > { %543 = vst.msk [vmem:[%s919_s14 + $0xc] sm:$0xf] %vm539_vm5, %v840_v55  ;;  %v503_v4 = vpack.c.bf16 %v495_v60, %v495_v60  ;;  %v511_v10 = vld [vmem:[#allocation3] sm:$0xff]  ;;  %v505_v11 = vpack.c.bf16 %v497_v0, %v497_v0  ;;  %v506_v14 = vpack.c.bf16 %v498_v2, %v498_v2  ;;  %v502_v15 = vadd.f32 %v797_v56, %v490_v6  ;;  %v513_v16 = vld [vmem:[#allocation3 + $0x10] sm:$0xff]  ;;  %v514_v19 = vld [vmem:[#allocation3 + $0x18] sm:$0xff] }
  0xdc   : > { %544 = vst.msk [vmem:[%s919_s14 + $0x10] sm:$0xf] %vm539_vm5, %v840_v55  ;;  %v507_v17 = vpack.c.bf16 %v499_v5, %v499_v5  ;;  %v523_v18 = vadd.f32 %v798_v7, %v511_v10  ;;  %v508_v20 = vpack.c.bf16 %v500_v9, %v500_v9  ;;  %v524_v21 = vadd.f32 %v798_v7, %v512_v13  ;;  %v515_v22 = vld [vmem:[#allocation3 + $0x20] sm:$0xff]  ;;  %v516_v25 = vld [vmem:[#allocation3 + $0x28] sm:$0xff]  ;;  %v517_v28 = vld [vmem:[#allocation3 + $0x30] sm:$0xff] }
  0xdd   : > { %545 = vst.msk [vmem:[%s919_s14 + $0x14] sm:$0xf] %vm539_vm5, %v840_v55  ;;  %v509_v23 = vpack.c.bf16 %v501_v12, %v501_v12  ;;  %v525_v24 = vadd.f32 %v798_v7, %v513_v16  ;;  %v510_v26 = vpack.c.bf16 %v502_v15, %v502_v15  ;;  %v526_v27 = vadd.f32 %v798_v7, %v514_v19  ;;  %v518_v31 = vld [vmem:[#allocation3 + $0x38] sm:$0xff] }
  0xde   : > { %546 = vst.msk [vmem:[%s919_s14 + $0x18] sm:$0xf] %vm539_vm5, %v840_v55  ;;  %v531_v29 = vpack.c.bf16 %v523_v18, %v523_v18  ;;  %v527_v30 = vadd.f32 %v798_v7, %v515_v22  ;;  %v532_v32 = vpack.c.bf16 %v524_v21, %v524_v21  ;;  %v528_v33 = vadd.f32 %v798_v7, %v516_v25 }
  0xdf   : > { %547 = vst.msk [vmem:[%s919_s14 + $0x1c] sm:$0xf] %vm539_vm5, %v840_v55  ;;  %v533_v34 = vpack.c.bf16 %v525_v24, %v525_v24  ;;  %v529_v35 = vadd.f32 %v798_v7, %v517_v28  ;;  %v534_v36 = vpack.c.bf16 %v526_v27, %v526_v27  ;;  %v530_v37 = vadd.f32 %v798_v7, %v518_v31 }
  0xe0   : > { %548 = vst.msk [vmem:[%s919_s14 + $0x20] sm:$0xf] %vm539_vm5, %v840_v55  ;;  %v535_v38 = vpack.c.bf16 %v527_v30, %v527_v30  ;;  %v536_v39 = vpack.c.bf16 %v528_v33, %v528_v33 }
  0xe1   : > { %549 = vst.msk [vmem:[%s919_s14 + $0x24] sm:$0xf] %vm539_vm5, %v840_v55  ;;  %v537_v40 = vpack.c.bf16 %v529_v35, %v529_v35  ;;  %v538_v41 = vpack.c.bf16 %v530_v37, %v530_v37 }
  0xe2   : > { %550 = vst.msk [vmem:[%s919_s14 + $0x28] sm:$0xf] %vm539_vm5, %v840_v55 }
  0xe3   : > { %551 = vst.msk [vmem:[%s919_s14 + $0x2c] sm:$0xf] %vm539_vm5, %v840_v55 }
  0xe4   : > { %552 = vst.msk [vmem:[%s919_s14 + $0x30] sm:$0xf] %vm539_vm5, %v840_v55 }
  0xe5   : > { %553 = vst.msk [vmem:[%s919_s14 + $0x34] sm:$0xf] %vm539_vm5, %v840_v55 }
  0xe6   : > { %554 = vst.msk [vmem:[%s919_s14 + $0x38] sm:$0xf] %vm539_vm5, %v840_v55 }
  0xe7   : > { %555 = vst.msk [vmem:[%s919_s14 + $0x3c] sm:$0xf] %vm539_vm5, %v840_v55 }
  0xe8   : > { %557 = vst.msk [vmem:[%s924_s18] sm:$0xf] %vm556_vm6, %v840_v55 }
  0xe9   : > { %558 = vst.msk [vmem:[%s924_s18 + $0x4] sm:$0xf] %vm556_vm6, %v840_v55 }
  0xea   : > { %559 = vst.msk [vmem:[%s924_s18 + $0x8] sm:$0xf] %vm556_vm6, %v840_v55 }
  0xeb   : > { %560 = vst.msk [vmem:[%s924_s18 + $0xc] sm:$0xf] %vm556_vm6, %v840_v55 }
  0xec   : > { %561 = vst.msk [vmem:[%s924_s18 + $0x10] sm:$0xf] %vm556_vm6, %v840_v55 }
  0xed   : > { %562 = vst.msk [vmem:[%s924_s18 + $0x14] sm:$0xf] %vm556_vm6, %v840_v55 }
  0xee   : > { %563 = vst.msk [vmem:[%s924_s18 + $0x18] sm:$0xf] %vm556_vm6, %v840_v55 }
  0xef   : > { %564 = vst.msk [vmem:[%s924_s18 + $0x1c] sm:$0xf] %vm556_vm6, %v840_v55 }
  0xf0   : > { %565 = vst.msk [vmem:[%s924_s18 + $0x20] sm:$0xf] %vm556_vm6, %v840_v55 }
  0xf1   : > { %566 = vst.msk [vmem:[%s924_s18 + $0x24] sm:$0xf] %vm556_vm6, %v840_v55 }
  0xf2   : > { %567 = vst.msk [vmem:[%s924_s18 + $0x28] sm:$0xf] %vm556_vm6, %v840_v55 }
  0xf3   : > { %568 = vst.msk [vmem:[%s924_s18 + $0x2c] sm:$0xf] %vm556_vm6, %v840_v55 }
  0xf4   : > { %569 = vst.msk [vmem:[%s924_s18 + $0x30] sm:$0xf] %vm556_vm6, %v840_v55 }
  0xf5   : > { %570 = vst.msk [vmem:[%s924_s18 + $0x34] sm:$0xf] %vm556_vm6, %v840_v55 }
  0xf6   : > { %571 = vst.msk [vmem:[%s924_s18 + $0x38] sm:$0xf] %vm556_vm6, %v840_v55 }
  0xf7   : > { %572 = vst.msk [vmem:[%s924_s18 + $0x3c] sm:$0xf] %vm556_vm6, %v840_v55 }
  0xf8   : > { %573 = vst.msk [vmem:[%s919_s14] sm:$0xf] %vm539_vm5, %v503_v4 }
  0xf9   : > { %574 = vst.msk [vmem:[%s919_s14 + $0x4] sm:$0xf] %vm539_vm5, %v504_v8 }
  0xfa   : > { %575 = vst.msk [vmem:[%s919_s14 + $0x8] sm:$0xf] %vm539_vm5, %v505_v11 }
  0xfb   : > { %576 = vst.msk [vmem:[%s919_s14 + $0xc] sm:$0xf] %vm539_vm5, %v506_v14 }
  0xfc   : > { %577 = vst.msk [vmem:[%s919_s14 + $0x10] sm:$0xf] %vm539_vm5, %v507_v17 }
  0xfd   : > { %578 = vst.msk [vmem:[%s919_s14 + $0x14] sm:$0xf] %vm539_vm5, %v508_v20 }
  0xfe   : > { %579 = vst.msk [vmem:[%s919_s14 + $0x18] sm:$0xf] %vm539_vm5, %v509_v23 }
  0xff   : > { %580 = vst.msk [vmem:[%s919_s14 + $0x1c] sm:$0xf] %vm539_vm5, %v510_v26 }
 0x100   : > { %581 = vst.msk [vmem:[%s924_s18] sm:$0xf] %vm556_vm6, %v531_v29 }
 0x101   : > { %582 = vst.msk [vmem:[%s924_s18 + $0x4] sm:$0xf] %vm556_vm6, %v532_v32 }
 0x102   : > { %583 = vst.msk [vmem:[%s924_s18 + $0x8] sm:$0xf] %vm556_vm6, %v533_v34 }
 0x103   : > { %584 = vst.msk [vmem:[%s924_s18 + $0xc] sm:$0xf] %vm556_vm6, %v534_v36 }
 0x104   : > { %585 = vst.msk [vmem:[%s924_s18 + $0x10] sm:$0xf] %vm556_vm6, %v535_v38 }
 0x105   : > { %586 = vst.msk [vmem:[%s924_s18 + $0x14] sm:$0xf] %vm556_vm6, %v536_v39 }
 0x106   : > { %587 = vst.msk [vmem:[%s924_s18 + $0x18] sm:$0xf] %vm556_vm6, %v537_v40 }
 0x107   : > { %588 = vst.msk [vmem:[%s924_s18 + $0x1c] sm:$0xf] %vm556_vm6, %v538_v41 }
 0x108 PF: > { %s17_s25 = sadd.s32 1, %s837_s25   ;;  %s1095_s21 = smov %s829_s23 }
 0x109   : > { %p14_p9 = scmp.ge.s32.totalorder %s17_s25, 10   ;;  %s1096_s22 = smov %s833_s24 }
 0x10a   : > { %s1097_s23 = smov %s1100_s26  ;;  %s1098_s24 = smov %s1104_s27 }
 0x10b   :  { %16 = sbr.rel (!%p14_p9) target bundleno = 3 (0x3), region = 90 }

</bundles_post_ra>
